<compile_context>
chip_gen: v7x
topology: tpu7x:2x2x1
jax: 0.10.0
libtpu: 0.0.40
codegen_flags: <defaults>
</compile_context>

<pallas_src>
import functools

import jax
import jax.numpy as jnp
from jax.experimental import pallas as pl
from jax.experimental.pallas import tpu as pltpu

EPSILON = 1e-9  # matches the `epsilon` constant used in the reference repo


def _round_up(x, m):
    return (x + m - 1) // m * m


def _vmem_capacity_bytes():
    """Generation-aware physical VMEM size (v5e/v6e: 128 MiB, v7x: 64 MiB)."""
    try:
        info = pltpu.get_tpu_info()
        cap = int(getattr(info, "vmem_capacity_bytes", 64 << 20))
        if cap <= 0:
            cap = 64 << 20
    except Exception:
        cap = 64 << 20  # conservative fallback (smallest generation)
    return cap


def _alignment_vae_kernel(a_ref, xe_ref, w_ref, b_ref, o_ref, pooled_ref, *,
                          pooling, ones_col):
    """One grid step: a tile of TB batch elements x one vocab tile.

    a_ref      : [TB, Sy_pad, Sx_pad] bf16  alignment tile (zero padded)
    xe_ref     : [TB, Sx_pad, E_pad]  bf16  gathered embeddings; column
                                            `ones_col` is all-ones so the first
                                            matmul also yields the avg-pooling
                                            denominator (row sums of A).
    w_ref      : [E_pad, TV]          bf16  categorical weight tile (rows >= E zero)
    b_ref      : [1, TV]              f32   bias tile
    o_ref      : [TB, Sy_pad, TV]           logits tile
    pooled_ref : [TB, Sy_pad, E_pad]  bf16  VMEM scratch, carries the pooled
                                            activations across vocab tiles.
    """
    # Pooling matmul + avg normalization only once per batch tile; the vocab
    # axis (innermost, "arbitrary") reuses the scratch.
    @pl.when(pl.program_id(1) == 0)
    def _():
        pooled = jnp.einsum(
            "bqs,bse->bqe", a_ref[...], xe_ref[...],
            preferred_element_type=jnp.float32,
        )  # [TB, Sy_pad, E_pad] f32
        if pooling == "avg":
            # Row sums of A came out of the same matmul (ones column) -> no
            # XLU reduce; reciprocal of the small column + broadcast multiply
            # instead of a full-tile divide.
            denom = pooled[:, :, ones_col:ones_col + 1] + EPSILON  # [TB,Sy,1]
            pooled = pooled * (1.0 / denom)
        pooled_ref[...] = pooled.astype(pooled_ref.dtype)

    tb, syp, ep = pooled_ref.shape
    # Fold (TB, Sy_pad) into one MXU row dimension for the vocab matmul.
    rows = pooled_ref[...].reshape(tb * syp, ep)                 # bf16 operands
    logits = jnp.dot(rows, w_ref[...], preferred_element_type=jnp.float32)
    logits = logits + b_ref[...]                                 # f32 bias add
    o_ref[...] = logits.reshape(tb, syp, -1).astype(o_ref.dtype)


def prepare_params(emb_table, w_cat, b_cat, *, compute_dtype=jnp.bfloat16):
    """One-time (outside the per-step hot path) pad / transpose / cast.

    emb_table : [src_vocab, E] f32 (padding_idx row already zeroed)
    w_cat     : [V, E] f32  (nn.Linear weight layout)
    b_cat     : [V]    f32
    """
    V, E = w_cat.shape
    E_pad = _round_up(E + 1, 128)        # +1 lane for the ones/denominator column

    V_pad = _round_up(V, 128)            # lane-dense vocab dimension
    if V_pad > 2048:
        V_pad = _round_up(V_pad, 2048)   # vocab tile width = 2048 for big vocabs

    emb_pad = jnp.zeros((emb_table.shape[0], E_pad), compute_dtype)
    emb_pad = emb_pad.at[:, :E].set(emb_table.astype(compute_dtype))
    emb_pad = emb_pad.at[:, E].set(1.0)  # ones column -> denominator via MXU

    # INVARIANT: rows >= E of w_pad stay zero (the ones column must not leak
    # into the logits).
    w_pad = jnp.zeros((E_pad, V_pad), compute_dtype)
    w_pad = w_pad.at[:E, :V].set(jnp.transpose(w_cat).astype(compute_dtype))

    b_pad = jnp.zeros((1, V_pad), jnp.float32)
    b_pad = b_pad.at[0, :V].set(b_cat.astype(jnp.float32))
    return emb_pad, w_pad, b_pad


@functools.partial(
    jax.jit,
    static_argnames=("emb_size", "tgt_vocab_size", "pooling", "out_dtype"))
def alignment_vae_forward(x, A, emb_pad, w_pad, b_pad, *,
                          emb_size, tgt_vocab_size, pooling="avg",
                          out_dtype=jnp.float32):
    """JAX wrapper mirroring AlignmentVAE.forward(x, A).

    x       : [B, Sx] int32 token ids
    A       : [B, Sy, Sx] float alignment matrix
    emb_pad, w_pad, b_pad : outputs of prepare_params (padded, bf16/f32)
    returns : [B, Sy, tgt_vocab_size] logits (out_dtype; bf16 halves the
              dominant HBM store in this mem-bound kernel if downstream allows)
    """
    B, Sy, Sx = A.shape
    E_pad = emb_pad.shape[1]
    V_pad = w_pad.shape[1]
    compute_dtype = w_pad.dtype
    cdt_bytes = jnp.dtype(compute_dtype).itemsize
    out_bytes = jnp.dtype(out_dtype).itemsize

    # bf16 packs 16 sublanes per vreg -> pad Sy to a multiple of 16.
    Sy_pad = _round_up(Sy, 16)
    Sx_pad = _round_up(Sx, 128)
    TV = V_pad if V_pad <= 2048 else 2048

    vmem_cap = _vmem_capacity_bytes()
    vmem_budget = int(vmem_cap * 0.6)

    def tile_vmem_bytes(tb):
        return (2 * tb * Sy_pad * Sx_pad * cdt_bytes     # A tile (double buffered)
                + 2 * tb * Sx_pad * E_pad * cdt_bytes    # x_embed tile
                + 2 * E_pad * TV * cdt_bytes             # weight tile
                + 2 * TV * 4                             # bias tile
                + 2 * tb * Sy_pad * TV * out_bytes       # logits tile
                + tb * Sy_pad * E_pad * cdt_bytes)       # pooled scratch

    # Target ~512 folded MXU rows (TB*Sy_pad) per vocab matmul, bounded by the
    # batch size and by the generation-aware VMEM budget (auto-shrinks TB when
    # E_pad / Sx_pad grow, which matters most on v7x's 64 MiB VMEM).
    TB = max(1, 512 // Sy_pad)
    TB = max(1, min(TB, B))
    while TB > 1 and tile_vmem_bytes(TB) > vmem_budget:
        TB //= 2
    B_pad = _round_up(B, TB)

    # Zero padding (jnp.pad fuses; skipped entirely when already aligned).
    # Padded A entries are exact zeros, so padding contributes nothing to
    # either matmul or the avg denominator.
    pad_b, pad_sy, pad_sx = B_pad - B, Sy_pad - Sy, Sx_pad - Sx
    x_pad = x
    if pad_b or pad_sx:
        x_pad = jnp.pad(x, ((0, pad_b), (0, pad_sx)))
    A_pad = A.astype(compute_dtype)
    if pad_b or pad_sy or pad_sx:
        A_pad = jnp.pad(A_pad, ((0, pad_b), (0, pad_sy), (0, pad_sx)))

    # Embedding gather (glue).
    # TODO(synk): fuse this gather into the kernel (token ids via SMEM block +
    # VMEM-resident emb_pad) when src_vocab*E_pad fits comfortably in VMEM, to
    # drop the x_embed HBM round trip.
    x_embed = jnp.take(emb_pad, x_pad, axis=0)   # [B_pad, Sx_pad, E_pad] bf16

    nbt = B_pad // TB
    nvt = V_pad // TV

    kernel = functools.partial(
        _alignment_vae_kernel, pooling=pooling, ones_col=emb_size)

    vmem_limit = int(min(tile_vmem_bytes(TB) + (8 << 20), int(vmem_cap * 0.75)))
    vmem_limit = max(vmem_limit, 16 << 20)

    out_pad = pl.pallas_call(
        kernel,
        out_shape=jax.ShapeDtypeStruct((B_pad, Sy_pad, V_pad), out_dtype),
        grid_spec=pltpu.PrefetchScalarGridSpec(
            num_scalar_prefetch=0,
            grid=(nbt, nvt),
            in_specs=[
                pl.BlockSpec((TB, Sy_pad, Sx_pad), lambda bt, vt: (bt, 0, 0)),
                pl.BlockSpec((TB, Sx_pad, E_pad), lambda bt, vt: (bt, 0, 0)),
                pl.BlockSpec((E_pad, TV), lambda bt, vt: (0, vt)),
                pl.BlockSpec((1, TV), lambda bt, vt: (0, vt)),
            ],
            out_specs=pl.BlockSpec((TB, Sy_pad, TV), lambda bt, vt: (bt, 0, vt)),
            scratch_shapes=[pltpu.VMEM((TB, Sy_pad, E_pad), compute_dtype)],
        ),
        compiler_params=pltpu.CompilerParams(
            # Vocab axis must be "arbitrary": the pooled scratch is carried
            # across vocab tiles of the same batch tile.
            dimension_semantics=("parallel", "arbitrary"),
            vmem_limit_bytes=vmem_limit,
        ),
    )(A_pad, x_embed, w_pad, b_pad)

    return out_pad[:B, :Sy, :tgt_vocab_size]


def _reference_forward(x, A, emb_table, w_cat, b_cat, pooling="avg"):
    """Pure-f32 reference reproducing the PyTorch math."""
    x_embed = jnp.take(emb_table, x, axis=0)                              # [B, Sx, E]
    pooled = jnp.einsum("bts,bse->bte", A, x_embed, precision="highest")  # [B, Sy, E]
    if pooling == "avg":
        pooled = pooled / (jnp.sum(A, axis=-1, keepdims=True) + EPSILON)
    return jnp.einsum("bte,ve->btv", pooled, w_cat, precision="highest") + b_cat


def _reference_forward_bf16(x, A, emb_table, w_cat, b_cat, pooling="avg"):
    """Reference matching the kernel's bf16-operand / f32-accumulate numerics."""
    f = lambda t: t.astype(jnp.bfloat16).astype(jnp.float32)
    x_embed = jnp.take(f(emb_table), x, axis=0)
    pooled = jnp.einsum("bts,bse->bte", f(A), x_embed, precision="highest")
    if pooling == "avg":
        inv = 1.0 / (jnp.sum(f(A), axis=-1, keepdims=True) + EPSILON)
        pooled = pooled * inv
    pooled = f(pooled)
    return jnp.einsum("bte,ve->btv", pooled, f(w_cat), precision="highest") + b_cat


if __name__ == "__main__":
    # Small, module-consistent shapes.
    B, Sx, Sy = 2, 8, 8
    src_vocab, tgt_vocab, emb_size = 16, 64, 32
    pad_idx = 0

    key = jax.random.PRNGKey(0)
    k_emb, k_w, k_b, k_x, k_a = jax.random.split(key, 5)

    # Deterministic parameter init (shapes follow AlignmentVAE.__init__).
    emb_table = 0.1 * jax.random.normal(k_emb, (src_vocab, emb_size), jnp.float32)
    emb_table = emb_table.at[pad_idx].set(0.0)  # padding_idx row is zero
    w_cat = 0.1 * jax.random.normal(k_w, (tgt_vocab, emb_size), jnp.float32)
    b_cat = 0.01 * jax.random.normal(k_b, (tgt_vocab,), jnp.float32)

    # Inputs: source tokens and a sampled 0/1 alignment matrix A.
    x = jax.random.randint(k_x, (B, Sx), 0, src_vocab, dtype=jnp.int32)
    A = jax.random.bernoulli(k_a, 0.5, (B, Sy, Sx)).astype(jnp.float32)

    # One-time parameter preparation (pad / transpose / cast).
    emb_pad, w_pad, b_pad = prepare_params(emb_table, w_cat, b_cat)

    for pooling in ("avg", "sum"):
        logits = alignment_vae_forward(
            x, A, emb_pad, w_pad, b_pad,
            emb_size=emb_size, tgt_vocab_size=tgt_vocab, pooling=pooling)
        logits = jax.block_until_ready(logits)

        assert logits.shape == (B, Sy, tgt_vocab)

        # Tight check vs. a reference with identical bf16-operand numerics.
        ref_matched = _reference_forward_bf16(
            x, A, emb_table, w_cat, b_cat, pooling=pooling)
        assert jnp.allclose(logits, ref_matched, atol=1e-4, rtol=1e-4), \
            f"mismatch vs bf16-matched reference (pooling={pooling})"

        # Semantics sanity check vs. the pure-f32 PyTorch math (bf16
        # quantization of operands accounts for the looser tolerance).
        ref_f32 = _reference_forward(x, A, emb_table, w_cat, b_cat, pooling=pooling)
        assert jnp.allclose(logits, ref_f32, atol=1e-2, rtol=5e-2), \
            f"mismatch vs f32 reference (pooling={pooling})"

    # TODO(synk): InferenceNetwork / loss paths (RNN encoders, distributions, KL)
    # are not part of AlignmentVAE.forward and are left out of the kernel.
    print("KERNEL_OK")
</pallas_src>

<mosaic_0001>
module attributes {stable_mosaic.version = 11 : i64} {
  func.func @_alignment_vae_kernel(%arg0: i32, %arg1: i32, %arg2: memref<2x16x128xbf16, #tpu.memory_space<vmem>>, %arg3: memref<2x128x128xbf16, #tpu.memory_space<vmem>>, %arg4: memref<128x128xbf16, #tpu.memory_space<vmem>>, %arg5: memref<1x128xf32, #tpu.memory_space<vmem>>, %arg6: memref<2x16x128xf32, #tpu.memory_space<vmem>>, %arg7: memref<2x16x128xbf16, #tpu.memory_space<vmem>>) attributes {dimension_semantics = [#tpu.dimension_semantics<parallel>, #tpu.dimension_semantics<arbitrary>], iteration_bounds = array<i64: 1, 1>, scalar_prefetch = 0 : i64, scratch_operands = 1 : i64, tpu.core_type = #tpu.core_type<tc>, window_params = [{transform_indices = @transform_0, window_bounds = array<i64: 2, 16, 128>}, {transform_indices = @transform_1, window_bounds = array<i64: 2, 128, 128>}, {transform_indices = @transform_2, window_bounds = array<i64: 128, 128>}, {transform_indices = @transform_3, window_bounds = array<i64: 1, 128>}, {transform_indices = @transform_4, window_bounds = array<i64: 2, 16, 128>}]} {
    %c0_i32 = arith.constant 0 : i32
    %0 = arith.cmpi eq, %arg1, %c0_i32 : i32
    %1 = arith.extui %0 : i1 to i32
    %c0_i32_0 = arith.constant 0 : i32
    %2 = arith.cmpi ne, %1, %c0_i32_0 : i32
    scf.if %2 {
      %c0_10 = arith.constant 0 : index
      %c0_11 = arith.constant 0 : index
      %c0_12 = arith.constant 0 : index
      %12 = vector.load %arg2[%c0_10, %c0_11, %c0_12] : memref<2x16x128xbf16, #tpu.memory_space<vmem>>, vector<2x16x128xbf16>
      %c0_13 = arith.constant 0 : index
      %c0_14 = arith.constant 0 : index
      %c0_15 = arith.constant 0 : index
      %13 = vector.load %arg3[%c0_13, %c0_14, %c0_15] : memref<2x128x128xbf16, #tpu.memory_space<vmem>>, vector<2x128x128xbf16>
      "tpu.trace_start"() <{level = 10 : i32, message = "bqs,bse->bqe"}> : () -> ()
      %cst_16 = arith.constant dense<0.000000e+00> : vector<2x16x128xf32>
      %14 = tpu.matmul %12, %13, %cst_16 {dimension_numbers = #tpu.dot_dimension_numbers<[2], [1], [1], [2], [0, 0, 0, 1, 1, 2], [0], [0]>} : vector<2x16x128xbf16>, vector<2x128x128xbf16>, vector<2x16x128xf32> -> vector<2x16x128xf32>
      "tpu.trace_stop"() : () -> ()
      %15 = vector.extract_strided_slice %14 {offsets = [0, 0, 32], sizes = [2, 16, 1], strides = [1, 1, 1]} : vector<2x16x128xf32> to vector<2x16x1xf32>
      %cst_17 = arith.constant 9.99999971E-10 : f32
      %16 = vector.broadcast %cst_17 : f32 to vector<2x16x1xf32>
      %17 = arith.addf %15, %16 : vector<2x16x1xf32>
      %cst_18 = arith.constant 1.000000e+00 : f32
      %18 = vector.broadcast %cst_18 : f32 to vector<2x16x1xf32>
      %19 = arith.divf %18, %17 : vector<2x16x1xf32>
      %20 = vector.broadcast %19 : vector<2x16x1xf32> to vector<2x16x128xf32>
      %21 = arith.mulf %14, %20 : vector<2x16x128xf32>
      %22 = arith.truncf %21 : vector<2x16x128xf32> to vector<2x16x128xbf16>
      %c0_19 = arith.constant 0 : index
      %c0_20 = arith.constant 0 : index
      %c0_21 = arith.constant 0 : index
      %23 = vector.load %arg7[%c0_19, %c0_20, %c0_21] : memref<2x16x128xbf16, #tpu.memory_space<vmem>>, vector<2x16x128xbf16>
      tpu.vector_store %arg7[%c0_19, %c0_20, %c0_21], %22 {strides = array<i32>} : memref<2x16x128xbf16, #tpu.memory_space<vmem>>, vector<2x16x128xbf16>,
    } else {
    }
    %c0 = arith.constant 0 : index
    %c0_1 = arith.constant 0 : index
    %c0_2 = arith.constant 0 : index
    %3 = vector.load %arg7[%c0, %c0_1, %c0_2] : memref<2x16x128xbf16, #tpu.memory_space<vmem>>, vector<2x16x128xbf16>
    %4 = vector.shape_cast %3 : vector<2x16x128xbf16> to vector<32x128xbf16>
    %c0_3 = arith.constant 0 : index
    %c0_4 = arith.constant 0 : index
    %5 = vector.load %arg4[%c0_3, %c0_4] : memref<128x128xbf16, #tpu.memory_space<vmem>>, vector<128x128xbf16>
    %cst = arith.constant dense<0.000000e+00> : vector<32x128xf32>
    %6 = tpu.matmul %4, %5, %cst {dimension_numbers = #tpu.dot_dimension_numbers<[1], [0], [0], [1], [0, 0, 1, 1], [], []>} : vector<32x128xbf16>, vector<128x128xbf16>, vector<32x128xf32> -> vector<32x128xf32>
    %c0_5 = arith.constant 0 : index
    %c0_6 = arith.constant 0 : index
    %7 = vector.load %arg5[%c0_5, %c0_6] : memref<1x128xf32, #tpu.memory_space<vmem>>, vector<1x128xf32>
    %8 = vector.broadcast %7 : vector<1x128xf32> to vector<32x128xf32>
    %9 = arith.addf %6, %8 : vector<32x128xf32>
    %10 = vector.shape_cast %9 : vector<32x128xf32> to vector<2x16x128xf32>
    %c0_7 = arith.constant 0 : index
    %c0_8 = arith.constant 0 : index
    %c0_9 = arith.constant 0 : index
    %11 = vector.load %arg6[%c0_7, %c0_8, %c0_9] : memref<2x16x128xf32, #tpu.memory_space<vmem>>, vector<2x16x128xf32>
    tpu.vector_store %arg6[%c0_7, %c0_8, %c0_9], %10 {strides = array<i32>} : memref<2x16x128xf32, #tpu.memory_space<vmem>>, vector<2x16x128xf32>,
    return
  }
  func.func @transform_0(%arg0: i32, %arg1: i32) -> (i32, i32, i32) {
    %c0_i32 = arith.constant 0 : i32
    %c0_i32_0 = arith.constant 0 : i32
    %c0_i32_1 = arith.constant 0 : i32
    return %arg0, %c0_i32, %c0_i32_0 : i32, i32, i32
  }
  func.func @transform_1(%arg0: i32, %arg1: i32) -> (i32, i32, i32) {
    %c0_i32 = arith.constant 0 : i32
    %c0_i32_0 = arith.constant 0 : i32
    %c0_i32_1 = arith.constant 0 : i32
    return %arg0, %c0_i32, %c0_i32_0 : i32, i32, i32
  }
  func.func @transform_2(%arg0: i32, %arg1: i32) -> (i32, i32) {
    %c0_i32 = arith.constant 0 : i32
    %c0_i32_0 = arith.constant 0 : i32
    return %c0_i32, %arg1 : i32, i32
  }
  func.func @transform_3(%arg0: i32, %arg1: i32) -> (i32, i32) {
    %c0_i32 = arith.constant 0 : i32
    %c0_i32_0 = arith.constant 0 : i32
    return %c0_i32, %arg1 : i32, i32
  }
  func.func @transform_4(%arg0: i32, %arg1: i32) -> (i32, i32, i32) {
    %c0_i32 = arith.constant 0 : i32
    %c0_i32_0 = arith.constant 0 : i32
    return %arg0, %c0_i32, %arg1 : i32, i32, i32
  }
}

</mosaic_0001>

<bundles_post_ra>
// kernel: alignment_vae_forward.1
= control target key start
LH: loop header
LB: loop body
LE: loop exit
PB: predicated region body
PF: predicated region fallthrough
CT: control target
= control target key end

     0   :  { %v572_v0 = vmov 0.0   ;;  %vm573_vm0 = vmmov 0   ;;  %v574_v19 = vmov 32   ;;  %s693_s1 = inlined_call_operand.vmem [shape: bf16[2,128,128], index: 1, kind: input, shape index: {}]   ;;  %s694_s0 = inlined_call_operand.vmem [shape: bf16[2,16,128], index: 0, kind: input, shape index: {}]   ;;  %s695_s2 = inlined_call_operand.vmem [shape: bf16[128,128], index: 2, kind: input, shape index: {}]   ;;  %s696_s3 = inlined_call_operand.vmem [shape: f32[1,128], index: 3, kind: input, shape index: {}]   ;;  %s697_s4 = inlined_call_operand.vmem [shape: f32[2,16,128], index: 4, kind: output, shape index: {}]  }
   0x1   :  { %473 = vmatprep.subr.bf16.mxu0 %v572_v0  ;;  %493 = vmatprep.subr.bf16.mxu1 %v572_v0  ;;  %v538_v1 = vld [vmem:[%s693_s1] sm:$0xff]   ;;  %v540_v3 = vld [vmem:[%s693_s1 + $0x8] sm:$0xff]   ;;  %v542_v5 = vld [vmem:[%s693_s1 + $0x10] sm:$0xff]  }
   0x2   :  { %v539_v2 = vld [vmem:[%s693_s1 + $0x40] sm:$0xff]   ;;  %489 = vmatprep.mubr.msk.bf16.mxu0 %vm573_vm0, %v572_v0  ;;  %509 = vmatprep.mubr.msk.bf16.mxu1 %vm573_vm0, %v572_v0  ;;  %v541_v4 = vld [vmem:[%s693_s1 + $0x48] sm:$0xff]   ;;  %v543_v6 = vld [vmem:[%s693_s1 + $0x50] sm:$0xff]  }
   0x3   :  { %474 = vmatpush3.bf16.msra.mxu0 %v538_v1  ;;  %494 = vmatpush3.bf16.msra.mxu1 %v539_v2  ;;  %v544_v7 = vld [vmem:[%s693_s1 + $0x18] sm:$0xff]   ;;  %v546_v9 = vld [vmem:[%s693_s1 + $0x20] sm:$0xff]   ;;  %v548_v11 = vld [vmem:[%s693_s1 + $0x28] sm:$0xff]  }
   0x4   :  { %475 = vmatprep.subr.bf16.mxu0 %v572_v0  ;;  %495 = vmatprep.subr.bf16.mxu1 %v572_v0  ;;  %v545_v8 = vld [vmem:[%s693_s1 + $0x58] sm:$0xff]   ;;  %v547_v10 = vld [vmem:[%s693_s1 + $0x60] sm:$0xff]   ;;  %v549_v12 = vld [vmem:[%s693_s1 + $0x68] sm:$0xff]  }
   0x5   :  { %v550_v13 = vld [vmem:[%s693_s1 + $0x30] sm:$0xff]   ;;  %v552_v15 = vld [vmem:[%s693_s1 + $0x38] sm:$0xff]   ;;  %v554_v17 = vld [vmem:[%s694_s0] sm:$0xff]   ;;  %537 = vset.pattern.permute.xlu1 %v574_v19  ;;  %536 = vset.pattern.permute.xlu0 %v574_v19 }
   0x6   :  { %v551_v14 = vld [vmem:[%s693_s1 + $0x70] sm:$0xff]   ;;  %v553_v16 = vld [vmem:[%s693_s1 + $0x78] sm:$0xff]   ;;  %v555_v18 = vld [vmem:[%s694_s0 + $0x8] sm:$0xff]  }
   0x7   :  { %476 = vmatpush3.bf16.msra.mxu0 %v540_v3  ;;  %496 = vmatpush3.bf16.msra.mxu1 %v541_v4  ;;  %v556_v20 = vld [vmem:[%s695_s2] sm:$0xff]   ;;  %v557_v21 = vld [vmem:[%s695_s2 + $0x8] sm:$0xff]   ;;  %v558_v22 = vld [vmem:[%s695_s2 + $0x10] sm:$0xff]  }
   0x8   :  { %477 = vmatprep.subr.bf16.mxu0 %v572_v0  ;;  %497 = vmatprep.subr.bf16.mxu1 %v572_v0  ;;  %v559_v23 = vld [vmem:[%s695_s2 + $0x18] sm:$0xff]   ;;  %v560_v24 = vld [vmem:[%s695_s2 + $0x20] sm:$0xff]   ;;  %v561_v25 = vld [vmem:[%s695_s2 + $0x28] sm:$0xff]  }
   0x9   :  { %v562_v40 = vld [vmem:[%s695_s2 + $0x30] sm:$0xff]   ;;  %v563_v43 = vld [vmem:[%s695_s2 + $0x38] sm:$0xff]   ;;  %v436_v54 = vld [vmem:[%s696_s3] ss:$0 sm:$0xff] }
   0xb   :  { %478 = vmatpush3.bf16.msra.mxu0 %v542_v5  ;;  %498 = vmatpush3.bf16.msra.mxu1 %v543_v6 }
   0xc   :  { %479 = vmatprep.subr.bf16.mxu0 %v572_v0  ;;  %499 = vmatprep.subr.bf16.mxu1 %v572_v0 }
   0xf   :  { %480 = vmatpush3.bf16.msra.mxu0 %v544_v7  ;;  %500 = vmatpush3.bf16.msra.mxu1 %v545_v8 }
  0x10   :  { %481 = vmatprep.subr.bf16.mxu0 %v572_v0  ;;  %501 = vmatprep.subr.bf16.mxu1 %v572_v0 }
  0x13   :  { %482 = vmatpush3.bf16.msra.mxu0 %v546_v9  ;;  %502 = vmatpush3.bf16.msra.mxu1 %v547_v10 }
  0x14   :  { %483 = vmatprep.subr.bf16.mxu0 %v572_v0  ;;  %503 = vmatprep.subr.bf16.mxu1 %v572_v0 }
  0x17   :  { %484 = vmatpush3.bf16.msra.mxu0 %v548_v11  ;;  %504 = vmatpush3.bf16.msra.mxu1 %v549_v12 }
  0x18   :  { %485 = vmatprep.subr.bf16.mxu0 %v572_v0  ;;  %505 = vmatprep.subr.bf16.mxu1 %v572_v0 }
  0x1b   :  { %486 = vmatpush3.bf16.msra.mxu0 %v550_v13  ;;  %506 = vmatpush3.bf16.msra.mxu1 %v551_v14 }
  0x1c   :  { %487 = vmatprep.subr.bf16.mxu0 %v572_v0  ;;  %507 = vmatprep.subr.bf16.mxu1 %v572_v0 }
  0x1f   :  { %488 = vmatpush3.bf16.msra.mxu0 %v552_v15  ;;  %508 = vmatpush3.bf16.msra.mxu1 %v553_v16 }
  0x20   :  { %513 = vmatprep.subr.bf16.mxu0 %v556_v20 }
  0x22   :  { %490 = vmatmul.mubr.bf16.vlgmr.msra.gmra.mrb[0].mxu0 %v554_v17  ;;  %510 = vmatmul.mubr.bf16.vlgmr.msra.gmra.mrb[0].mxu1 %v555_v18 }
  0x23   :  { %514 = vmatpush3.bf16.msra.mxu0 %v556_v20 }
  0x24   :  { %515 = vmatprep.subr.bf16.mxu0 %v557_v21 }
  0x27   :  { %516 = vmatpush3.bf16.msra.mxu0 %v557_v21 }
  0x28   :  { %517 = vmatprep.subr.bf16.mxu0 %v558_v22 }
  0x2b   :  { %518 = vmatpush3.bf16.msra.mxu0 %v558_v22 }
  0x2c   :  { %519 = vmatprep.subr.bf16.mxu0 %v559_v23 }
  0x2f   :  { %520 = vmatpush3.bf16.msra.mxu0 %v559_v23 }
  0x30   :  { %521 = vmatprep.subr.bf16.mxu0 %v560_v24 }
  0x33   :  { %522 = vmatpush3.bf16.msra.mxu0 %v560_v24 }
  0x34   :  { %523 = vmatprep.subr.bf16.mxu0 %v561_v25 }
  0x37   :  { %524 = vmatpush3.bf16.msra.mxu0 %v561_v25 }
  0x38   :  { %525 = vmatprep.subr.bf16.mxu0 %v562_v40 }
  0x3b   :  { %526 = vmatpush3.bf16.msra.mxu0 %v562_v40 }
  0x3c   :  { %527 = vmatprep.subr.bf16.mxu0 %v563_v43 }
  0x3f   :  { %528 = vmatpush3.bf16.msra.mxu0 %v563_v43 }
  0xf5   :  { %v146_v26 = vpop.f32.mrb[0].mxu0  ;;  %v241_v28 = vpop.f32.mrb[0].mxu1 }
  0xf6   :  { %v248_v27 = vadd.f32 1e-09, %v146_v26  ;;  %v491_v29 = vpop.f32.mrb[1].mxu0  ;;  %v250_v30 = vadd.f32 1e-09, %v241_v28  ;;  %v511_v31 = vpop.f32.mrb[1].mxu1 }
  0xf7   :  { %v149_v32 = vpop.f32.mrb[2].mxu0  ;;  %v244_v34 = vpop.f32.mrb[2].mxu1 }
  0xf8   :  { %564 = vrcp.f32 %v248_v27  ;;  %v249_v33 = vadd.f32 1e-09, %v149_v32  ;;  %v492_v35 = vpop.f32.mrb[3].mxu0  ;;  %v251_v36 = vadd.f32 1e-09, %v244_v34  ;;  %v512_v37 = vpop.f32.mrb[3].mxu1 }
  0xf9   :  { %566 = vrcp.f32 %v250_v30 }
  0xfa   :  { %568 = vrcp.f32 %v249_v33 }
  0xfb   :  { %570 = vrcp.f32 %v251_v36 }
 0x102   :  { %v565_v38 = vpop.eup %564 }
 0x103   :  { %v567_v39 = vpop.eup %566  ;;  %262 = vperm.xlu0 %536, %v565_v38  }
 0x104   :  { %272 = vperm.xlu1 %537, %v567_v39   ;;  %v569_v41 = vpop.eup %568 }
 0x105   :  { %v571_v42 = vpop.eup %570 }
 0x107   :  { %267 = vperm.xlu0 %536, %v569_v41  }
 0x108   :  { %277 = vperm.xlu1 %537, %v571_v42  }
 0x182   :  { %v263_v44 = vpop.permute.xlu0 %262 }
 0x183   :  { %v273_v45 = vpop.permute.xlu1 %272  ;;  %v280_v47 = vmul.f32 %v263_v44, %v146_v26 }
 0x184   :  { %v282_v50 = vmul.f32 %v273_v45, %v241_v28 }
 0x186   :  { %v268_v46 = vpop.permute.xlu0 %267 }
 0x187   :  { %v278_v48 = vpop.permute.xlu1 %277  ;;  %v281_v49 = vmul.f32 %v268_v46, %v149_v32 }
 0x188   :  { %v283_v51 = vmul.f32 %v278_v48, %v244_v34 }
 0x189   :  { %v284_v52 = vpack.c.bf16 %v281_v49, %v280_v47 }
 0x18a   :  { %v285_v53 = vpack.c.bf16 %v283_v51, %v282_v50 }
 0x18b   :  { %529 = vmatprep.mubr.bf16.mxu0 %v284_v52 }
 0x18c   :  { %530 = vmatmul.mubr.bf16.vlgmr.msra.gmra.mrb[4].mxu0 %v285_v53 }
 0x25f   :  { %v531_v55 = vpop.f32.mrb[4].mxu0 }
 0x260   :  { %v404_v56 = vadd.f32 %v531_v55, %v436_v54  ;;  %v395_v57 = vpop.f32.mrb[5].mxu0 }
 0x261   :  { %v396_v58 = vadd.f32 %v436_v54, %v395_v57  ;;  %v532_v59 = vpop.f32.mrb[6].mxu0 }
 0x262   :  { %412 = vst [vmem:[%s697_s4 + $0x10] sm:$0xff] %v404_v56  ;;  %v407_v60 = vadd.f32 %v532_v59, %v436_v54  ;;  %v398_v61 = vpop.f32.mrb[7].mxu0 }
 0x263   :  { %410 = vst [vmem:[%s697_s4] sm:$0xff] %v396_v58  ;;  %v399_v62 = vadd.f32 %v436_v54, %v398_v61 }
 0x264   :  { %413 = vst [vmem:[%s697_s4 + $0x18] sm:$0xff] %v407_v60 }
 0x265   :  { %411 = vst [vmem:[%s697_s4 + $0x8] sm:$0xff] %v399_v62 }

</bundles_post_ra>
